<compile_context>
chip_gen: v7x
topology: tpu7x:2x2x1
jax: 0.10.0
libtpu: 0.0.40
codegen_flags: <defaults>
</compile_context>

<pallas_src>
import functools

import numpy as np
import jax
import jax.numpy as jnp
from jax.experimental import pallas as pl
from jax.experimental.pallas import tpu as pltpu


def _normalize(h, eps=1e-5):
    """LayerNorm without the affine part (affine is folded into the next matmul)."""
    mu = jnp.mean(h, axis=-1, keepdims=True)
    var = jnp.mean(jnp.square(h - mu), axis=-1, keepdims=True)
    return (h - mu) * jax.lax.rsqrt(var + eps)


def _attention_mlp(xp, num_heads, head_dim, C,
                   qkv_w, qkv_b, proj_w, proj_b,
                   fc1_w, fc1_b, fc2_w, fc2_b):
    """Frequency_attention block on an (M, C) tile. xp is f32, matmuls bf16->f32.

    norm1/norm2 affine weights and the softmax scale are pre-folded into
    qkv_w/qkv_b and fc1_w/fc1_b by the wrapper (trace-time, exact math).
    """
    # ---- attention branch ----
    h = _normalize(xp).astype(jnp.bfloat16)
    qkv = jnp.dot(h, qkv_w[...], preferred_element_type=jnp.float32) + qkv_b[...]   # (M, 3C)

    def split_heads(base):  # -> (H, M, head_dim), static lane slices, no relayout matmul
        return jnp.stack(
            [qkv[:, base + hh * head_dim: base + (hh + 1) * head_dim]
             for hh in range(num_heads)], axis=0).astype(jnp.bfloat16)

    q3 = split_heads(0)
    k3 = split_heads(C)
    v3 = split_heads(2 * C)

    # batched over heads, contraction on the last axes (no materialized transpose)
    s = jnp.einsum('hqd,hkd->hqk', q3, k3,
                   preferred_element_type=jnp.float32)                              # (H, M, M)
    s = s - jnp.max(s, axis=-1, keepdims=True)
    p = jnp.exp(s)
    att = p * pl.reciprocal(jnp.sum(p, axis=-1, keepdims=True), approx=True)
    o3 = jnp.einsum('hqk,hkd->hqd', att.astype(jnp.bfloat16), v3,
                    preferred_element_type=jnp.float32)                             # (H, M, hd)
    attn = jnp.concatenate([o3[hh] for hh in range(num_heads)], axis=-1)            # (M, C)
    attn = jnp.dot(attn.astype(jnp.bfloat16), proj_w[...],
                   preferred_element_type=jnp.float32) + proj_b[...]
    xp = xp + attn

    # ---- MLP branch: fc1 -> GELU -> fc2 ----
    h2 = _normalize(xp).astype(jnp.bfloat16)
    h2 = jnp.dot(h2, fc1_w[...], preferred_element_type=jnp.float32) + fc1_b[...]
    h2 = jax.nn.gelu(h2, approximate=True).astype(jnp.bfloat16)                     # tanh-GELU (EUP)
    h2 = jnp.dot(h2, fc2_w[...], preferred_element_type=jnp.float32) + fc2_b[...]
    return xp + h2


def _fusion_kernel_pooled(num_heads, head_dim, C, M, pool_k,
                          x_ref,
                          qkv_w, qkv_b, proj_w, proj_b,
                          fc1_w, fc1_b, fc2_w, fc2_b,
                          o_ref):
    """Fast path for N == pool_k * M: pooling / interp via strided sublane access."""
    # AdaptiveAvgPool1d(M): mean over consecutive groups of pool_k rows
    # (pairwise/tree sum to keep the f32-add dependency chain shallow).
    if pool_k == 1:
        xp = x_ref[...]
    else:
        parts = [x_ref[pl.ds(r, M, stride=pool_k), :] for r in range(pool_k)]
        while len(parts) > 1:
            nxt = [parts[i] + parts[i + 1] for i in range(0, len(parts) - 1, 2)]
            if len(parts) % 2:
                nxt.append(parts[-1])
            parts = nxt
        xp = parts[0] * (1.0 / pool_k)

    y = _attention_mlp(xp, num_heads, head_dim, C,
                       qkv_w, qkv_b, proj_w, proj_b,
                       fc1_w, fc1_b, fc2_w, fc2_b)

    # nearest interpolation back to N (output row i <- y[i // pool_k]) + residual.
    if pool_k == 1:
        o_ref[...] = y + x_ref[...]
    else:
        for r in range(pool_k):
            idx = pl.ds(r, M, stride=pool_k)
            o_ref[idx, :] = y + x_ref[idx, :]


def _fusion_kernel_matmul(num_heads, head_dim, C, M,
                          x_ref, P_ref, S_ref,
                          qkv_w, qkv_b, proj_w, proj_b,
                          fc1_w, fc1_b, fc2_w, fc2_b,
                          o_ref):
    """Fallback for ragged N (N % M != 0): explicit pooling / interp matrices.
    TODO(synk): replace the dense one-hot interp matmul with an index-based gather."""
    xp = jnp.dot(P_ref[...], x_ref[...], preferred_element_type=jnp.float32)
    y = _attention_mlp(xp, num_heads, head_dim, C,
                       qkv_w, qkv_b, proj_w, proj_b,
                       fc1_w, fc1_b, fc2_w, fc2_b)
    o_ref[...] = jnp.dot(S_ref[...], y, preferred_element_type=jnp.float32) + x_ref[...]


def adaptive_avg_pool_matrix(N, M):
    """P (M, N) such that P @ x == AdaptiveAvgPool1d(M) over a length-N axis."""
    P = np.zeros((M, N), np.float32)
    for j in range(M):
        start = (j * N) // M
        end = -((-(j + 1) * N) // M)        # ceil((j+1)*N/M)
        P[j, start:end] = 1.0 / (end - start)
    return P


def nearest_interp_matrix(M, N):
    """S (N, M) such that S @ x == F.interpolate(x, size=N, mode='nearest')."""
    S = np.zeros((N, M), np.float32)
    scale = M / N
    for i in range(N):
        S[i, min(int(np.floor(i * scale)), M - 1)] = 1.0
    return S


def make_params(key, C, mlp_hidden):
    ks = jax.random.split(key, 9)

    def lin(k, fan_in, shape):
        return (jax.random.normal(k, shape, jnp.float32) / np.sqrt(fan_in)).astype(jnp.float32)

    return dict(
        ln1_w=1.0 + 0.1 * jax.random.normal(ks[5], (1, C), jnp.float32),
        ln1_b=0.1 * jax.random.normal(ks[6], (1, C), jnp.float32),
        qkv_w=lin(ks[0], C, (C, 3 * C)),
        qkv_b=0.02 * jax.random.normal(ks[1], (1, 3 * C), jnp.float32),
        proj_w=lin(ks[2], C, (C, C)),
        proj_b=0.02 * jax.random.normal(ks[7], (1, C), jnp.float32),
        ln2_w=1.0 + 0.1 * jax.random.normal(ks[8], (1, C), jnp.float32),
        ln2_b=jnp.zeros((1, C), jnp.float32),
        fc1_w=lin(ks[3], C, (C, mlp_hidden)),
        fc1_b=jnp.zeros((1, mlp_hidden), jnp.float32),
        fc2_w=lin(ks[4], mlp_hidden, (mlp_hidden, C)),
        fc2_b=jnp.zeros((1, C), jnp.float32),
    )


def fusion_forward(x, params, cluster_feature, num_heads=2):
    B, N, C = x.shape
    M = int(cluster_feature)
    assert C % num_heads == 0
    head_dim = C // num_heads

    # ---- trace-time weight folding (exact f32 math on tiny weight tensors) ----
    # norm1 affine  -> qkv:   LN(x)@W + c == n(x)@(diag(w)W) + (b@W + c)
    # softmax scale -> q columns of the folded qkv weight / bias
    # norm2 affine  -> fc1
    scale = head_dim ** -0.5
    col_scale = jnp.concatenate(
        [jnp.full((C,), scale, jnp.float32), jnp.ones((2 * C,), jnp.float32)])[None, :]

    qkv_w = (params['qkv_w'] * params['ln1_w'].reshape(C, 1)) * col_scale
    qkv_b = (params['ln1_b'] @ params['qkv_w'] + params['qkv_b']) * col_scale
    fc1_w = params['fc1_w'] * params['ln2_w'].reshape(C, 1)
    fc1_b = params['ln2_b'] @ params['fc1_w'] + params['fc1_b']

    weights = (
        qkv_w.astype(jnp.bfloat16), qkv_b,                       # biases stay f32
        params['proj_w'].astype(jnp.bfloat16), params['proj_b'],
        fc1_w.astype(jnp.bfloat16), fc1_b,
        params['fc2_w'].astype(jnp.bfloat16), params['fc2_b'],
    )

    pool_k = N // M if M > 0 else 0
    use_strided = (M > 0) and (N % M == 0) and (pool_k >= 1) and (pool_k <= 32)

    if use_strided:
        kernel = functools.partial(_fusion_kernel_pooled,
                                   num_heads, head_dim, C, M, pool_k)
        operands = (x,) + weights
    else:
        kernel = functools.partial(_fusion_kernel_matmul,
                                   num_heads, head_dim, C, M)
        P = jnp.asarray(adaptive_avg_pool_matrix(N, M))
        S = jnp.asarray(nearest_interp_matrix(M, N))
        operands = (x, P, S) + weights

    def full_spec(a):
        nd = a.ndim
        return pl.BlockSpec(a.shape, lambda b, _nd=nd: (0,) * _nd)

    xo_spec = pl.BlockSpec((None, N, C), lambda b: (b, 0, 0))
    in_specs = [xo_spec] + [full_spec(a) for a in operands[1:]]

    return pl.pallas_call(
        kernel,
        out_shape=jax.ShapeDtypeStruct((B, N, C), jnp.float32),
        grid_spec=pltpu.PrefetchScalarGridSpec(
            num_scalar_prefetch=0,
            grid=(B,),
            in_specs=in_specs,
            out_specs=xo_spec,
        ),
        input_output_aliases={0: 0},
        compiler_params=pltpu.CompilerParams(
            dimension_semantics=("parallel",)),
    )(*operands)


def fusion_reference(x, params, P, S, num_heads):
    """Pure-JAX f32 reference mirroring the PyTorch module (for validation)."""
    B, N, C = x.shape
    hd = C // num_heads
    xp = jnp.einsum('mn,bnc->bmc', P, x)
    M = xp.shape[1]

    def ln(h, w, b):
        mu = h.mean(-1, keepdims=True)
        var = ((h - mu) ** 2).mean(-1, keepdims=True)
        return (h - mu) / jnp.sqrt(var + 1e-5) * w + b

    h = ln(xp, params['ln1_w'], params['ln1_b'])
    qkv = h @ params['qkv_w'] + params['qkv_b']
    q, k, v = qkv[..., :C], qkv[..., C:2 * C], qkv[..., 2 * C:]

    def heads(t):
        return t.reshape(B, M, num_heads, hd).transpose(0, 2, 1, 3)

    qh, kh, vh = heads(q), heads(k), heads(v)
    att = jnp.einsum('bhmd,bhnd->bhmn', qh, kh) * hd ** -0.5
    att = jax.nn.softmax(att, axis=-1)
    o = jnp.einsum('bhmn,bhnd->bhmd', att, vh).transpose(0, 2, 1, 3).reshape(B, M, C)
    o = o @ params['proj_w'] + params['proj_b']
    xp = xp + o
    h2 = ln(xp, params['ln2_w'], params['ln2_b'])
    h2 = jax.nn.gelu(h2 @ params['fc1_w'] + params['fc1_b'],
                     approximate=False) @ params['fc2_w'] + params['fc2_b']
    xp = xp + h2
    return jnp.einsum('nm,bmc->bnc', S, xp) + x


if __name__ == "__main__":
    num_heads = 2
    B, C = 2, 32
    M = 16                       # cluster_feature (scaled down from the default 2304)
    mlp_hidden = 4 * C

    key = jax.random.PRNGKey(0)
    kx, kp, kx2 = jax.random.split(key, 3)
    params = make_params(kp, C, mlp_hidden)
    # Round weights to bf16-representable values so that the f32 reference and the
    # bf16-matmul kernel see (nearly) identical parameters.
    params = jax.tree_util.tree_map(
        lambda a: a.astype(jnp.bfloat16).astype(jnp.float32), params)

    # --- case 1: N divisible by cluster_feature -> strided pool/interp fast path ---
    N = 64
    x = jax.random.normal(kx, (B, N, C), jnp.float32)
    ref = fusion_reference(x, params,
                           jnp.asarray(adaptive_avg_pool_matrix(N, M)),
                           jnp.asarray(nearest_interp_matrix(M, N)), num_heads)
    out = jax.block_until_ready(fusion_forward(x, params, M, num_heads))
    assert out.shape == (B, N, C)
    np.testing.assert_allclose(np.asarray(out), np.asarray(ref), rtol=5e-2, atol=5e-2)

    # --- case 2: ragged N -> pooling/interp matrix fallback path ---
    N2 = 56
    x2 = jax.random.normal(kx2, (B, N2, C), jnp.float32)
    ref2 = fusion_reference(x2, params,
                            jnp.asarray(adaptive_avg_pool_matrix(N2, M)),
                            jnp.asarray(nearest_interp_matrix(M, N2)), num_heads)
    out2 = jax.block_until_ready(fusion_forward(x2, params, M, num_heads))
    np.testing.assert_allclose(np.asarray(out2), np.asarray(ref2), rtol=5e-2, atol=5e-2)

    print("KERNEL_OK")
</pallas_src>

<mosaic_0001>
module attributes {stable_mosaic.version = 11 : i64} {
  func.func @_fusion_kernel_pooled(%arg0: i32, %arg1: memref<1x64x32xf32, #tpu.memory_space<vmem>>, %arg2: memref<32x96xbf16, #tpu.memory_space<vmem>>, %arg3: memref<1x96xf32, #tpu.memory_space<vmem>>, %arg4: memref<32x32xbf16, #tpu.memory_space<vmem>>, %arg5: memref<1x32xf32, #tpu.memory_space<vmem>>, %arg6: memref<32x128xbf16, #tpu.memory_space<vmem>>, %arg7: memref<1x128xf32, #tpu.memory_space<vmem>>, %arg8: memref<128x32xbf16, #tpu.memory_space<vmem>>, %arg9: memref<1x32xf32, #tpu.memory_space<vmem>>, %arg10: memref<1x64x32xf32, #tpu.memory_space<vmem>>) attributes {dimension_semantics = [#tpu.dimension_semantics<parallel>], iteration_bounds = array<i64: 2>, scalar_prefetch = 0 : i64, scratch_operands = 0 : i64, tpu.core_type = #tpu.core_type<tc>, window_params = [{transform_indices = @transform_0, window_bounds = array<i64: 1, 64, 32>}, {pipeline_mode = #tpu.pipeline_mode<synchronous>, transform_indices = @transform_1, window_bounds = array<i64: 32, 96>}, {pipeline_mode = #tpu.pipeline_mode<synchronous>, transform_indices = @transform_2, window_bounds = array<i64: 1, 96>}, {pipeline_mode = #tpu.pipeline_mode<synchronous>, transform_indices = @transform_3, window_bounds = array<i64: 32, 32>}, {pipeline_mode = #tpu.pipeline_mode<synchronous>, transform_indices = @transform_4, window_bounds = array<i64: 1, 32>}, {pipeline_mode = #tpu.pipeline_mode<synchronous>, transform_indices = @transform_5, window_bounds = array<i64: 32, 128>}, {pipeline_mode = #tpu.pipeline_mode<synchronous>, transform_indices = @transform_6, window_bounds = array<i64: 1, 128>}, {pipeline_mode = #tpu.pipeline_mode<synchronous>, transform_indices = @transform_7, window_bounds = array<i64: 128, 32>}, {pipeline_mode = #tpu.pipeline_mode<synchronous>, transform_indices = @transform_8, window_bounds = array<i64: 1, 32>}, {transform_indices = @transform_9, window_bounds = array<i64: 1, 64, 32>}]} {
    %c0 = arith.constant 0 : index
    %c0_0 = arith.constant 0 : index
    %c0_1 = arith.constant 0 : index
    %0 = tpu.strided_load %arg1[%c0, %c0_0, %c0_1] {strides = array<i32: 1, 4, 1>} : memref<1x64x32xf32, #tpu.memory_space<vmem>>, vector<1x16x32xf32>
    %1 = vector.shape_cast %0 : vector<1x16x32xf32> to vector<16x32xf32>
    %c0_2 = arith.constant 0 : index
    %c1 = arith.constant 1 : index
    %c0_3 = arith.constant 0 : index
    %2 = tpu.strided_load %arg1[%c0_2, %c1, %c0_3] {strides = array<i32: 1, 4, 1>} : memref<1x64x32xf32, #tpu.memory_space<vmem>>, vector<1x16x32xf32>
    %3 = vector.shape_cast %2 : vector<1x16x32xf32> to vector<16x32xf32>
    %c0_4 = arith.constant 0 : index
    %c2 = arith.constant 2 : index
    %c0_5 = arith.constant 0 : index
    %4 = tpu.strided_load %arg1[%c0_4, %c2, %c0_5] {strides = array<i32: 1, 4, 1>} : memref<1x64x32xf32, #tpu.memory_space<vmem>>, vector<1x16x32xf32>
    %5 = vector.shape_cast %4 : vector<1x16x32xf32> to vector<16x32xf32>
    %c0_6 = arith.constant 0 : index
    %c3 = arith.constant 3 : index
    %c0_7 = arith.constant 0 : index
    %6 = tpu.strided_load %arg1[%c0_6, %c3, %c0_7] {strides = array<i32: 1, 4, 1>} : memref<1x64x32xf32, #tpu.memory_space<vmem>>, vector<1x16x32xf32>
    %7 = vector.shape_cast %6 : vector<1x16x32xf32> to vector<16x32xf32>
    %8 = arith.addf %1, %3 : vector<16x32xf32>
    %9 = arith.addf %5, %7 : vector<16x32xf32>
    %10 = arith.addf %8, %9 : vector<16x32xf32>
    %cst = arith.constant 2.500000e-01 : f32
    %11 = vector.broadcast %cst : f32 to vector<16x32xf32>
    %12 = arith.mulf %10, %11 : vector<16x32xf32>
    %cst_8 = arith.constant dense<0.000000e+00> : vector<16xf32>
    %13 = vector.multi_reduction <add>, %12, %cst_8 [1] : vector<16x32xf32> to vector<16xf32>
    %14 = vector.shape_cast %13 : vector<16xf32> to vector<16x1xf32>
    %cst_9 = arith.constant 3.200000e+01 : f32
    %15 = vector.broadcast %cst_9 : f32 to vector<16x1xf32>
    %16 = arith.divf %14, %15 : vector<16x1xf32>
    %17 = vector.broadcast %16 : vector<16x1xf32> to vector<16x32xf32>
    %18 = arith.subf %12, %17 : vector<16x32xf32>
    %19 = arith.mulf %18, %18 : vector<16x32xf32>
    %cst_10 = arith.constant dense<0.000000e+00> : vector<16xf32>
    %20 = vector.multi_reduction <add>, %19, %cst_10 [1] : vector<16x32xf32> to vector<16xf32>
    %21 = vector.shape_cast %20 : vector<16xf32> to vector<16x1xf32>
    %cst_11 = arith.constant 3.200000e+01 : f32
    %22 = vector.broadcast %cst_11 : f32 to vector<16x1xf32>
    %23 = arith.divf %21, %22 : vector<16x1xf32>
    %24 = vector.broadcast %16 : vector<16x1xf32> to vector<16x32xf32>
    %25 = arith.subf %12, %24 : vector<16x32xf32>
    %cst_12 = arith.constant 9.99999974E-6 : f32
    %26 = vector.broadcast %cst_12 : f32 to vector<16x1xf32>
    %27 = arith.addf %23, %26 : vector<16x1xf32>
    %28 = math.rsqrt %27 : vector<16x1xf32>
    %29 = vector.broadcast %28 : vector<16x1xf32> to vector<16x32xf32>
    %30 = arith.mulf %25, %29 : vector<16x32xf32>
    %31 = arith.truncf %30 : vector<16x32xf32> to vector<16x32xbf16>
    %c0_13 = arith.constant 0 : index
    %c0_14 = arith.constant 0 : index
    %32 = vector.load %arg2[%c0_13, %c0_14] : memref<32x96xbf16, #tpu.memory_space<vmem>>, vector<32x96xbf16>
    %cst_15 = arith.constant dense<0.000000e+00> : vector<16x96xf32>
    %33 = tpu.matmul %31, %32, %cst_15 {dimension_numbers = #tpu.dot_dimension_numbers<[1], [0], [0], [1], [0, 0, 1, 1], [], []>} : vector<16x32xbf16>, vector<32x96xbf16>, vector<16x96xf32> -> vector<16x96xf32>
    %c0_16 = arith.constant 0 : index
    %c0_17 = arith.constant 0 : index
    %34 = vector.load %arg3[%c0_16, %c0_17] : memref<1x96xf32, #tpu.memory_space<vmem>>, vector<1x96xf32>
    %35 = vector.broadcast %34 : vector<1x96xf32> to vector<16x96xf32>
    %36 = arith.addf %33, %35 : vector<16x96xf32>
    %37 = vector.extract_strided_slice %36 {offsets = [0, 0], sizes = [16, 16], strides = [1, 1]} : vector<16x96xf32> to vector<16x16xf32>
    %38 = vector.extract_strided_slice %36 {offsets = [0, 16], sizes = [16, 16], strides = [1, 1]} : vector<16x96xf32> to vector<16x16xf32>
    %39 = vector.shape_cast %37 : vector<16x16xf32> to vector<1x16x16xf32>
    %40 = vector.shape_cast %38 : vector<16x16xf32> to vector<1x16x16xf32>
    %41 = tpu.concatenate %39, %40 in 0 : vector<1x16x16xf32>, vector<1x16x16xf32> -> vector<2x16x16xf32>
    %42 = arith.truncf %41 : vector<2x16x16xf32> to vector<2x16x16xbf16>
    %43 = vector.extract_strided_slice %36 {offsets = [0, 32], sizes = [16, 16], strides = [1, 1]} : vector<16x96xf32> to vector<16x16xf32>
    %44 = vector.extract_strided_slice %36 {offsets = [0, 48], sizes = [16, 16], strides = [1, 1]} : vector<16x96xf32> to vector<16x16xf32>
    %45 = vector.shape_cast %43 : vector<16x16xf32> to vector<1x16x16xf32>
    %46 = vector.shape_cast %44 : vector<16x16xf32> to vector<1x16x16xf32>
    %47 = tpu.concatenate %45, %46 in 0 : vector<1x16x16xf32>, vector<1x16x16xf32> -> vector<2x16x16xf32>
    %48 = arith.truncf %47 : vector<2x16x16xf32> to vector<2x16x16xbf16>
    %49 = vector.extract_strided_slice %36 {offsets = [0, 64], sizes = [16, 16], strides = [1, 1]} : vector<16x96xf32> to vector<16x16xf32>
    %50 = vector.extract_strided_slice %36 {offsets = [0, 80], sizes = [16, 16], strides = [1, 1]} : vector<16x96xf32> to vector<16x16xf32>
    %51 = vector.shape_cast %49 : vector<16x16xf32> to vector<1x16x16xf32>
    %52 = vector.shape_cast %50 : vector<16x16xf32> to vector<1x16x16xf32>
    %53 = tpu.concatenate %51, %52 in 0 : vector<1x16x16xf32>, vector<1x16x16xf32> -> vector<2x16x16xf32>
    %54 = arith.truncf %53 : vector<2x16x16xf32> to vector<2x16x16xbf16>
    "tpu.trace_start"() <{level = 10 : i32, message = "hqd,hkd->hqk"}> : () -> ()
    %cst_18 = arith.constant dense<0.000000e+00> : vector<2x16x16xf32>
    %55 = tpu.matmul %42, %48, %cst_18 {dimension_numbers = #tpu.dot_dimension_numbers<[2], [2], [1], [1], [0, 0, 0, 1, 1, 1], [0], [0]>} : vector<2x16x16xbf16>, vector<2x16x16xbf16>, vector<2x16x16xf32> -> vector<2x16x16xf32>
    "tpu.trace_stop"() : () -> ()
    %cst_19 = arith.constant dense<0xFF800000> : vector<2x16xf32>
    %56 = vector.multi_reduction <maximumf>, %55, %cst_19 [2] : vector<2x16x16xf32> to vector<2x16xf32>
    %57 = vector.shape_cast %56 : vector<2x16xf32> to vector<2x16x1xf32>
    %58 = vector.broadcast %57 : vector<2x16x1xf32> to vector<2x16x16xf32>
    %59 = arith.subf %55, %58 : vector<2x16x16xf32>
    %60 = math.exp %59 : vector<2x16x16xf32>
    %cst_20 = arith.constant dense<0.000000e+00> : vector<2x16xf32>
    %61 = vector.multi_reduction <add>, %60, %cst_20 [2] : vector<2x16x16xf32> to vector<2x16xf32>
    %62 = vector.shape_cast %61 : vector<2x16xf32> to vector<2x16x1xf32>
    %63 = tpu.reciprocal %62 {approx = true} : vector<2x16x1xf32> -> vector<2x16x1xf32>
    %64 = vector.broadcast %63 : vector<2x16x1xf32> to vector<2x16x16xf32>
    %65 = arith.mulf %60, %64 : vector<2x16x16xf32>
    %66 = arith.truncf %65 : vector<2x16x16xf32> to vector<2x16x16xbf16>
    "tpu.trace_start"() <{level = 10 : i32, message = "hqk,hkd->hqd"}> : () -> ()
    %cst_21 = arith.constant dense<0.000000e+00> : vector<2x16x16xf32>
    %67 = tpu.matmul %66, %54, %cst_21 {dimension_numbers = #tpu.dot_dimension_numbers<[2], [1], [1], [2], [0, 0, 0, 1, 1, 2], [0], [0]>} : vector<2x16x16xbf16>, vector<2x16x16xbf16>, vector<2x16x16xf32> -> vector<2x16x16xf32>
    "tpu.trace_stop"() : () -> ()
    %68 = vector.extract_strided_slice %67 {offsets = [0, 0, 0], sizes = [1, 16, 16], strides = [1, 1, 1]} : vector<2x16x16xf32> to vector<1x16x16xf32>
    %69 = vector.shape_cast %68 : vector<1x16x16xf32> to vector<16x16xf32>
    %70 = vector.extract_strided_slice %67 {offsets = [1, 0, 0], sizes = [1, 16, 16], strides = [1, 1, 1]} : vector<2x16x16xf32> to vector<1x16x16xf32>
    %71 = vector.shape_cast %70 : vector<1x16x16xf32> to vector<16x16xf32>
    %72 = tpu.concatenate %69, %71 in 1 : vector<16x16xf32>, vector<16x16xf32> -> vector<16x32xf32>
    %73 = arith.truncf %72 : vector<16x32xf32> to vector<16x32xbf16>
    %c0_22 = arith.constant 0 : index
    %c0_23 = arith.constant 0 : index
    %74 = vector.load %arg4[%c0_22, %c0_23] : memref<32x32xbf16, #tpu.memory_space<vmem>>, vector<32x32xbf16>
    %cst_24 = arith.constant dense<0.000000e+00> : vector<16x32xf32>
    %75 = tpu.matmul %73, %74, %cst_24 {dimension_numbers = #tpu.dot_dimension_numbers<[1], [0], [0], [1], [0, 0, 1, 1], [], []>} : vector<16x32xbf16>, vector<32x32xbf16>, vector<16x32xf32> -> vector<16x32xf32>
    %c0_25 = arith.constant 0 : index
    %c0_26 = arith.constant 0 : index
    %76 = vector.load %arg5[%c0_25, %c0_26] : memref<1x32xf32, #tpu.memory_space<vmem>>, vector<1x32xf32>
    %77 = vector.broadcast %76 : vector<1x32xf32> to vector<16x32xf32>
    %78 = arith.addf %75, %77 : vector<16x32xf32>
    %79 = arith.addf %12, %78 : vector<16x32xf32>
    %cst_27 = arith.constant dense<0.000000e+00> : vector<16xf32>
    %80 = vector.multi_reduction <add>, %79, %cst_27 [1] : vector<16x32xf32> to vector<16xf32>
    %81 = vector.shape_cast %80 : vector<16xf32> to vector<16x1xf32>
    %cst_28 = arith.constant 3.200000e+01 : f32
    %82 = vector.broadcast %cst_28 : f32 to vector<16x1xf32>
    %83 = arith.divf %81, %82 : vector<16x1xf32>
    %84 = vector.broadcast %83 : vector<16x1xf32> to vector<16x32xf32>
    %85 = arith.subf %79, %84 : vector<16x32xf32>
    %86 = arith.mulf %85, %85 : vector<16x32xf32>
    %cst_29 = arith.constant dense<0.000000e+00> : vector<16xf32>
    %87 = vector.multi_reduction <add>, %86, %cst_29 [1] : vector<16x32xf32> to vector<16xf32>
    %88 = vector.shape_cast %87 : vector<16xf32> to vector<16x1xf32>
    %cst_30 = arith.constant 3.200000e+01 : f32
    %89 = vector.broadcast %cst_30 : f32 to vector<16x1xf32>
    %90 = arith.divf %88, %89 : vector<16x1xf32>
    %91 = vector.broadcast %83 : vector<16x1xf32> to vector<16x32xf32>
    %92 = arith.subf %79, %91 : vector<16x32xf32>
    %cst_31 = arith.constant 9.99999974E-6 : f32
    %93 = vector.broadcast %cst_31 : f32 to vector<16x1xf32>
    %94 = arith.addf %90, %93 : vector<16x1xf32>
    %95 = math.rsqrt %94 : vector<16x1xf32>
    %96 = vector.broadcast %95 : vector<16x1xf32> to vector<16x32xf32>
    %97 = arith.mulf %92, %96 : vector<16x32xf32>
    %98 = arith.truncf %97 : vector<16x32xf32> to vector<16x32xbf16>
    %c0_32 = arith.constant 0 : index
    %c0_33 = arith.constant 0 : index
    %99 = vector.load %arg6[%c0_32, %c0_33] : memref<32x128xbf16, #tpu.memory_space<vmem>>, vector<32x128xbf16>
    %cst_34 = arith.constant dense<0.000000e+00> : vector<16x128xf32>
    %100 = tpu.matmul %98, %99, %cst_34 {dimension_numbers = #tpu.dot_dimension_numbers<[1], [0], [0], [1], [0, 0, 1, 1], [], []>} : vector<16x32xbf16>, vector<32x128xbf16>, vector<16x128xf32> -> vector<16x128xf32>
    %c0_35 = arith.constant 0 : index
    %c0_36 = arith.constant 0 : index
    %101 = vector.load %arg7[%c0_35, %c0_36] : memref<1x128xf32, #tpu.memory_space<vmem>>, vector<1x128xf32>
    %102 = vector.broadcast %101 : vector<1x128xf32> to vector<16x128xf32>
    %103 = arith.addf %100, %102 : vector<16x128xf32>
    %104 = arith.mulf %103, %103 : vector<16x128xf32>
    %105 = arith.mulf %103, %104 : vector<16x128xf32>
    %cst_37 = arith.constant 4.471500e-02 : f32
    %106 = vector.broadcast %cst_37 : f32 to vector<16x128xf32>
    %107 = arith.mulf %106, %105 : vector<16x128xf32>
    %108 = arith.addf %103, %107 : vector<16x128xf32>
    %cst_38 = arith.constant 0.797884583 : f32
    %109 = vector.broadcast %cst_38 : f32 to vector<16x128xf32>
    %110 = arith.mulf %109, %108 : vector<16x128xf32>
    %111 = math.tanh %110 : vector<16x128xf32>
    %cst_39 = arith.constant 1.000000e+00 : f32
    %112 = vector.broadcast %cst_39 : f32 to vector<16x128xf32>
    %113 = arith.addf %112, %111 : vector<16x128xf32>
    %cst_40 = arith.constant 5.000000e-01 : f32
    %114 = vector.broadcast %cst_40 : f32 to vector<16x128xf32>
    %115 = arith.mulf %114, %113 : vector<16x128xf32>
    %116 = arith.mulf %103, %115 : vector<16x128xf32>
    %117 = arith.truncf %116 : vector<16x128xf32> to vector<16x128xbf16>
    %c0_41 = arith.constant 0 : index
    %c0_42 = arith.constant 0 : index
    %118 = vector.load %arg8[%c0_41, %c0_42] : memref<128x32xbf16, #tpu.memory_space<vmem>>, vector<128x32xbf16>
    %cst_43 = arith.constant dense<0.000000e+00> : vector<16x32xf32>
    %119 = tpu.matmul %117, %118, %cst_43 {dimension_numbers = #tpu.dot_dimension_numbers<[1], [0], [0], [1], [0, 0, 1, 1], [], []>} : vector<16x128xbf16>, vector<128x32xbf16>, vector<16x32xf32> -> vector<16x32xf32>
    %c0_44 = arith.constant 0 : index
    %c0_45 = arith.constant 0 : index
    %120 = vector.load %arg9[%c0_44, %c0_45] : memref<1x32xf32, #tpu.memory_space<vmem>>, vector<1x32xf32>
    %121 = vector.broadcast %120 : vector<1x32xf32> to vector<16x32xf32>
    %122 = arith.addf %119, %121 : vector<16x32xf32>
    %123 = arith.addf %79, %122 : vector<16x32xf32>
    %c0_46 = arith.constant 0 : index
    %c0_47 = arith.constant 0 : index
    %c0_48 = arith.constant 0 : index
    %124 = tpu.strided_load %arg1[%c0_46, %c0_47, %c0_48] {strides = array<i32: 1, 4, 1>} : memref<1x64x32xf32, #tpu.memory_space<vmem>>, vector<1x16x32xf32>
    %125 = vector.shape_cast %124 : vector<1x16x32xf32> to vector<16x32xf32>
    %126 = arith.addf %123, %125 : vector<16x32xf32>
    %c0_49 = arith.constant 0 : index
    %c0_50 = arith.constant 0 : index
    %c0_51 = arith.constant 0 : index
    %127 = tpu.strided_load %arg10[%c0_49, %c0_50, %c0_51] {strides = array<i32: 1, 4, 1>} : memref<1x64x32xf32, #tpu.memory_space<vmem>>, vector<1x16x32xf32>
    %128 = vector.shape_cast %127 : vector<1x16x32xf32> to vector<16x32xf32>
    %129 = vector.shape_cast %126 : vector<16x32xf32> to vector<1x16x32xf32>
    tpu.strided_store %arg10[%c0_49, %c0_50, %c0_51], %129 {strides = array<i32: 1, 4, 1>} : memref<1x64x32xf32, #tpu.memory_space<vmem>>, vector<1x16x32xf32>
    %c0_52 = arith.constant 0 : index
    %c1_53 = arith.constant 1 : index
    %c0_54 = arith.constant 0 : index
    %130 = tpu.strided_load %arg1[%c0_52, %c1_53, %c0_54] {strides = array<i32: 1, 4, 1>} : memref<1x64x32xf32, #tpu.memory_space<vmem>>, vector<1x16x32xf32>
    %131 = vector.shape_cast %130 : vector<1x16x32xf32> to vector<16x32xf32>
    %132 = arith.addf %123, %131 : vector<16x32xf32>
    %c0_55 = arith.constant 0 : index
    %c1_56 = arith.constant 1 : index
    %c0_57 = arith.constant 0 : index
    %133 = tpu.strided_load %arg10[%c0_55, %c1_56, %c0_57] {strides = array<i32: 1, 4, 1>} : memref<1x64x32xf32, #tpu.memory_space<vmem>>, vector<1x16x32xf32>
    %134 = vector.shape_cast %133 : vector<1x16x32xf32> to vector<16x32xf32>
    %135 = vector.shape_cast %132 : vector<16x32xf32> to vector<1x16x32xf32>
    tpu.strided_store %arg10[%c0_55, %c1_56, %c0_57], %135 {strides = array<i32: 1, 4, 1>} : memref<1x64x32xf32, #tpu.memory_space<vmem>>, vector<1x16x32xf32>
    %c0_58 = arith.constant 0 : index
    %c2_59 = arith.constant 2 : index
    %c0_60 = arith.constant 0 : index
    %136 = tpu.strided_load %arg1[%c0_58, %c2_59, %c0_60] {strides = array<i32: 1, 4, 1>} : memref<1x64x32xf32, #tpu.memory_space<vmem>>, vector<1x16x32xf32>
    %137 = vector.shape_cast %136 : vector<1x16x32xf32> to vector<16x32xf32>
    %138 = arith.addf %123, %137 : vector<16x32xf32>
    %c0_61 = arith.constant 0 : index
    %c2_62 = arith.constant 2 : index
    %c0_63 = arith.constant 0 : index
    %139 = tpu.strided_load %arg10[%c0_61, %c2_62, %c0_63] {strides = array<i32: 1, 4, 1>} : memref<1x64x32xf32, #tpu.memory_space<vmem>>, vector<1x16x32xf32>
    %140 = vector.shape_cast %139 : vector<1x16x32xf32> to vector<16x32xf32>
    %141 = vector.shape_cast %138 : vector<16x32xf32> to vector<1x16x32xf32>
    tpu.strided_store %arg10[%c0_61, %c2_62, %c0_63], %141 {strides = array<i32: 1, 4, 1>} : memref<1x64x32xf32, #tpu.memory_space<vmem>>, vector<1x16x32xf32>
    %c0_64 = arith.constant 0 : index
    %c3_65 = arith.constant 3 : index
    %c0_66 = arith.constant 0 : index
    %142 = tpu.strided_load %arg1[%c0_64, %c3_65, %c0_66] {strides = array<i32: 1, 4, 1>} : memref<1x64x32xf32, #tpu.memory_space<vmem>>, vector<1x16x32xf32>
    %143 = vector.shape_cast %142 : vector<1x16x32xf32> to vector<16x32xf32>
    %144 = arith.addf %123, %143 : vector<16x32xf32>
    %c0_67 = arith.constant 0 : index
    %c3_68 = arith.constant 3 : index
    %c0_69 = arith.constant 0 : index
    %145 = tpu.strided_load %arg10[%c0_67, %c3_68, %c0_69] {strides = array<i32: 1, 4, 1>} : memref<1x64x32xf32, #tpu.memory_space<vmem>>, vector<1x16x32xf32>
    %146 = vector.shape_cast %145 : vector<1x16x32xf32> to vector<16x32xf32>
    %147 = vector.shape_cast %144 : vector<16x32xf32> to vector<1x16x32xf32>
    tpu.strided_store %arg10[%c0_67, %c3_68, %c0_69], %147 {strides = array<i32: 1, 4, 1>} : memref<1x64x32xf32, #tpu.memory_space<vmem>>, vector<1x16x32xf32>
    return
  }
  func.func @transform_0(%arg0: i32) -> (i32, i32, i32) {
    %c0_i32 = arith.constant 0 : i32
    %c0_i32_0 = arith.constant 0 : i32
    %c0_i32_1 = arith.constant 0 : i32
    return %arg0, %c0_i32, %c0_i32_0 : i32, i32, i32
  }
  func.func @transform_1(%arg0: i32) -> (i32, i32) {
    %c0_i32 = arith.constant 0 : i32
    %c0_i32_0 = arith.constant 0 : i32
    %c0_i32_1 = arith.constant 0 : i32
    return %c0_i32, %c0_i32_0 : i32, i32
  }
  func.func @transform_2(%arg0: i32) -> (i32, i32) {
    %c0_i32 = arith.constant 0 : i32
    %c0_i32_0 = arith.constant 0 : i32
    %c0_i32_1 = arith.constant 0 : i32
    return %c0_i32, %c0_i32_0 : i32, i32
  }
  func.func @transform_3(%arg0: i32) -> (i32, i32) {
    %c0_i32 = arith.constant 0 : i32
    %c0_i32_0 = arith.constant 0 : i32
    %c0_i32_1 = arith.constant 0 : i32
    return %c0_i32, %c0_i32_0 : i32, i32
  }
  func.func @transform_4(%arg0: i32) -> (i32, i32) {
    %c0_i32 = arith.constant 0 : i32
    %c0_i32_0 = arith.constant 0 : i32
    %c0_i32_1 = arith.constant 0 : i32
    return %c0_i32, %c0_i32_0 : i32, i32
  }
  func.func @transform_5(%arg0: i32) -> (i32, i32) {
    %c0_i32 = arith.constant 0 : i32
    %c0_i32_0 = arith.constant 0 : i32
    %c0_i32_1 = arith.constant 0 : i32
    return %c0_i32, %c0_i32_0 : i32, i32
  }
  func.func @transform_6(%arg0: i32) -> (i32, i32) {
    %c0_i32 = arith.constant 0 : i32
    %c0_i32_0 = arith.constant 0 : i32
    %c0_i32_1 = arith.constant 0 : i32
    return %c0_i32, %c0_i32_0 : i32, i32
  }
  func.func @transform_7(%arg0: i32) -> (i32, i32) {
    %c0_i32 = arith.constant 0 : i32
    %c0_i32_0 = arith.constant 0 : i32
    %c0_i32_1 = arith.constant 0 : i32
    return %c0_i32, %c0_i32_0 : i32, i32
  }
  func.func @transform_8(%arg0: i32) -> (i32, i32) {
    %c0_i32 = arith.constant 0 : i32
    %c0_i32_0 = arith.constant 0 : i32
    %c0_i32_1 = arith.constant 0 : i32
    return %c0_i32, %c0_i32_0 : i32, i32
  }
  func.func @transform_9(%arg0: i32) -> (i32, i32, i32) {
    %c0_i32 = arith.constant 0 : i32
    %c0_i32_0 = arith.constant 0 : i32
    %c0_i32_1 = arith.constant 0 : i32
    return %arg0, %c0_i32, %c0_i32_0 : i32, i32, i32
  }
}

</mosaic_0001>

<bundles_post_ra>
// kernel: tpu_custom_call.1
= control target key start
LH: loop header
LB: loop body
LE: loop exit
PB: predicated region body
PF: predicated region fallthrough
CT: control target
= control target key end

     0   :  { %s1380_s30 = smov 0   ;;  %s1562_s0 = inlined_call_operand.vmem [shape: f32[2,64,32], index: 0, kind: input, shape index: {}, may-alias: {0,9}]   ;;  %s1563_s1 = inlined_call_operand.vmem [shape: bf16[32,96], index: 1, kind: input, shape index: {}]   ;;  %s1564_s2 = inlined_call_operand.vmem [shape: f32[1,96], index: 2, kind: input, shape index: {}]   ;;  %s1565_s3 = inlined_call_operand.vmem [shape: bf16[32,32], index: 3, kind: input, shape index: {}]   ;;  %s1566_s4 = inlined_call_operand.vmem [shape: f32[1,32], index: 4, kind: input, shape index: {}]   ;;  %s1567_s5 = inlined_call_operand.vmem [shape: bf16[32,128], index: 5, kind: input, shape index: {}]   ;;  %s1568_s6 = inlined_call_operand.vmem [shape: f32[1,128], index: 6, kind: input, shape index: {}]   ;;  %s1569_s7 = inlined_call_operand.vmem [shape: bf16[128,32], index: 7, kind: input, shape index: {}]   ;;  %s1570_s8 = inlined_call_operand.vmem [shape: f32[1,32], index: 8, kind: input, shape index: {}]   ;;  %s1571_s9 = inlined_call_operand.vmem [shape: f32[2,64,32], index: 9, kind: output, shape index: {}, may-alias: {0,9}]  }
   0x1 LB: > { %s1097_s10 = sadd.s32 4294967295, %s1322_s30   ;;  %p1101_p0 = scmp.ge.s32.totalorder %s1322_s30, 1  ;;  %s1322_s30 = sphi %s1380_s30, %s19_s30  }
   0x2   : > { %p287_p1 = scmp.lt.s32.totalorder %s1322_s30, 3 }
   0x4   : > { %p288_p2 = pnand %p1101_p0, %p287_p1 }
   0x5   : > { %p323_p3 = scmp.lt.s32.totalorder (!%p288_p2), %s1097_s10, 1  ;;  %vm357_vm0 = vcmask (!%p288_p2), 261120   ;;  %v1274_v28 = vld [vmem:[%s1563_s1] sm:$0xff] (!%p288_p2)   ;;  %v1324_v29 = vmov (!%p288_p2), 0.0   ;;  %vm1325_vm1 = vmmov (!%p288_p2), 0   ;;  %v1275_v30 = vld [vmem:[%s1563_s1 + $0x8] sm:$0xff] (!%p288_p2)  }
   0x6   : > { %291 = sbr.rel (%p288_p2) target bundleno = 2695 (0xa87), region = 56  ;;  %1182 = vmatprep.subr.bf16.mxu0 (!%p288_p2), %v1324_v29  ;;  %1186 = vmatprep.mubr.msk.bf16.mxu0 (!%p288_p2), %vm1325_vm1, %v1324_v29  ;;  %v1113_v42 = vld [vmem:[%s1564_s2] ss:$0 sm:$0xff] (!%p288_p2)  ;;  %s1326_s21 = smov (!%p288_p2), 112   ;;  %vm466_vm2 = vcmask (!%p288_p2), 130048  }
   0x7   : > { %1183 = vmatpush3.bf16.msra.mxu0 (!%p288_p2), %v1274_v28  ;;  %1202 = vmatprep.subr.bf16.mxu1 (!%p288_p2), %v1324_v29  ;;  %s1327_s22 = smov (!%p288_p2), 96   ;;  %s1328_s23 = smov (!%p288_p2), 64  }
   0x8   : > { %1184 = vmatprep.subr.bf16.mxu0 (!%p288_p2), %v1324_v29  ;;  %1204 = vmatprep.mubr.msk.bf16.mxu1 (!%p288_p2), %vm1325_vm1, %v1324_v29  ;;  %s1329_s28 = smov (!%p288_p2), 16  }
   0xb   : > { %1185 = vmatpush3.bf16.msra.mxu0 (!%p288_p2), %v1275_v30 }
   0xc   : > { %1190 = vmatprep.subr.bf16.mxu0 (!%p288_p2), %v1324_v29 }
   0xd   : > { %s1573_s10 = smov (!%p323_p3, %s1097_s10), 1 }
   0xe   : > { %s1154_s11 = sshll.u32 %s1573_s10, 6 }
   0xf   : > { %s1396_s14 = scalar_lea.vmem %s1562_s0, %s1154_s11 }
  0x10   : > { %v334_v0 = vld [vmem:[%s1396_s14] ss:$4 sm:$0xff]  ;;  %v1107_v1 = vld [vmem:[%s1396_s14 + $0x1] ss:$4 sm:$0xff]  ;;  %v1109_v2 = vld [vmem:[%s1396_s14 + $0x2] ss:$4 sm:$0xff] }
  0x11   : > { %v1111_v3 = vld [vmem:[%s1396_s14 + $0x3] ss:$4 sm:$0xff]  ;;  %v349_v4 = vadd.f32 %v1107_v1, %v334_v0  ;;  %v1106_v5 = vld [vmem:[%s1396_s14 + $0x20] ss:$4 sm:$0xff]  ;;  %v1108_v6 = vld [vmem:[%s1396_s14 + $0x21] ss:$4 sm:$0xff] }
  0x12   : > { %v351_v7 = vadd.f32 %v1111_v3, %v1109_v2  ;;  %v1110_v8 = vld [vmem:[%s1396_s14 + $0x22] ss:$4 sm:$0xff]  ;;  %v1112_v9 = vld [vmem:[%s1396_s14 + $0x23] ss:$4 sm:$0xff]  ;;  %v350_v10 = vadd.f32 %v1108_v6, %v1106_v5 }
  0x13   : > { %v352_v11 = vadd.f32 %v1112_v9, %v1110_v8 }
  0x14   : > { %v353_v12 = vadd.f32 %v351_v7, %v349_v4 }
  0x15   : > { %v354_v13 = vadd.f32 %v352_v11, %v350_v10 }
  0x16   : > { %v1406_v14 = vmul.f32 0.25, %v353_v12 }
  0x17   : > { %v1408_v15 = vmul.f32 0.25, %v354_v13 }
  0x18   : > { %v358_v16 = vsel %vm357_vm0, %v1406_v14, 0.0 }
  0x19   : > { %359 = vadd.xlane.f32.xlu0 %v358_v16  ;;  %v361_v17 = vsel %vm357_vm0, %v1408_v15, 0.0 }
  0x1d   : > { %362 = vadd.xlane.f32.xlu0 %v361_v17 }
  0xa6   : > { %v360_v18 = vpop.xlane.xlu0 %359 }
  0xa7   : > { %v365_v19 = vmul.f32 0.03125, %v360_v18 }
  0xa9   : > { %v367_v20 = vsub.f32 %v1406_v14, %v365_v19 }
  0xaa   : > { %v363_v21 = vpop.xlane.xlu0 %362 }
  0xab   : > { %v366_v22 = vmul.f32 0.03125, %v363_v21  ;;  %v369_v23 = vmul.f32 %v367_v20, %v367_v20 }
  0xad   : > { %v368_v24 = vsub.f32 %v1408_v15, %v366_v22  ;;  %v371_v25 = vsel %vm357_vm0, %v369_v23, 0.0 }
  0xae   : > { %372 = vadd.xlane.f32.xlu1 %v371_v25 }
  0xaf   : > { %v370_v26 = vmul.f32 %v368_v24, %v368_v24 }
  0xb1   : > { %v374_v27 = vsel %vm357_vm0, %v370_v26, 0.0 }
  0xb2   : > { %375 = vadd.xlane.f32.xlu1 %v374_v27 }
 0x13b   : > { %v373_v31 = vpop.xlane.xlu1 %372 }
 0x13c   : > { %v377_v32 = vmul.f32 0.03125, %v373_v31 }
 0x13e   : > { %v379_v33 = vadd.f32 1e-05, %v377_v32 }
 0x13f   : > { %v376_v34 = vpop.xlane.xlu1 %375 }
 0x140   : > { %v378_v35 = vmul.f32 0.03125, %v376_v34  ;;  %1288 = vrsqrt.f32 %v379_v33 }
 0x142   : > { %v380_v36 = vadd.f32 1e-05, %v378_v35 }
 0x144   : > { %1290 = vrsqrt.f32 %v380_v36 }
 0x14a   : > { %v1289_v37 = vpop.eup %1288 }
 0x14b   : > { %v383_v39 = vmul.f32 %v1289_v37, %v367_v20 }
 0x14e   : > { %v1291_v38 = vpop.eup %1290 }
 0x14f   : > { %v384_v40 = vmul.f32 %v1291_v38, %v368_v24 }
 0x151   : > { %v385_v41 = vpack.c.bf16 %v384_v40, %v383_v39 }
 0x153   : > { %1187 = vmatmul.mubr.msk.bf16.vlgmr.msra.gmra.mrb[0].mxu0 %vm357_vm0, %v385_v41 }
 0x154   : > { %1192 = vmatprep.mubr.msk.bf16.mxu0 %vm1325_vm1, %v1324_v29 }
 0x226   : > { %v446_v43 = vpop.f32.mrb[0].mxu0 }
 0x227   : > { %v1188_v44 = vpop.f32.mrb[1].mxu0  ;;  %v447_v46 = vadd.f32 %v1113_v42, %v446_v43 }
 0x228   : > { %v449_v45 = vpop.f32.mrb[2].mxu0 }
 0x229   : > { %v450_v47 = vadd.f32 %v1113_v42, %v449_v45  ;;  %v1189_v48 = vpop.f32.mrb[3].mxu0 }
 0x22b   : > { %v1264_v49 = vpack.i.bf16 %v450_v47, %v447_v46  ;;  %v1438_v50 = vpack.c.bf16 %v450_v47, %v447_v46  ;;  %v1276_v46 = vld [vmem:[%s1565_s3] sm:$0xff]   ;;  %v1277_v47 = vld [vmem:[%s1565_s3 + $0x8] sm:$0xff]  }
 0x22d   : > { %1265 = vrot.lane.b32.xlu0 %v1264_v49, %s1326_s21  ;;  %464 = vrot.lane.b32.xlu1 %v1438_v50, %s1327_s22 }
 0x29f   : > { %v1266_v51 = vpop.permute.xlu0 %1265  ;;  %v465_v52 = vpop.permute.xlu1 %464 }
 0x2a0   : > { %v1268_v53 = vunpack.i.h.bf16 %v1266_v51  ;;  %v1267_v54 = vunpack.i.l.bf16 %v1266_v51  ;;  %v471_v55 = vsel %vm466_vm2, %v465_v52, 0 }
 0x2a1   : > { %1191 = vmatpush3.bf16.xpose.msra.mxu0 %v471_v55 }
 0x2a2   : > { %v462_v56 = vpack.c.bf16 %v1268_v53, %v1267_v54  ;;  %1196 = vmatprep.subr.bf16.mxu0 %v1324_v29 }
 0x2a4   : > { %515 = vrot.lane.b32.xlu1 %v462_v56, %s1327_s22 }
 0x2a8   : > { %1193 = vmatmul.mubr.msk.bf16.vlgmr.msra.gmra.mrb[4].mxu0 %vm466_vm2, %v1438_v50 }
 0x2a9   : > { %1198 = vmatprep.mubr.msk.bf16.mxu0 %vm1325_vm1, %v1324_v29 }
 0x316   : > { %v516_v57 = vpop.permute.xlu1 %515 }
 0x317   : > { %v521_v58 = vsel %vm466_vm2, %v516_v57, 0 }
 0x318   : > { %1197 = vmatpush3.bf16.xpose.msra.mxu0 %v521_v58 }
 0x319   : > { %1208 = vmatprep.subr.bf16.mxu0 %v1324_v29 }
 0x31f   : > { %1199 = vmatmul.mubr.msk.bf16.vlgmr.msra.gmra.mrb[8].mxu0 %vm466_vm2, %v462_v56 }
 0x320   : > { %1210 = vmatprep.mubr.msk.bf16.mxu0 %vm1325_vm1, %v1324_v29 }
 0x37b   : > { %v507_v59 = vpop.f32.mrb[4].mxu0 }
 0x37c   : > { %v1194_v60 = vpop.f32.mrb[5].mxu0  ;;  %v564_v5 = vsel %vm466_vm2, %v507_v59, -inf }
 0x37d   : > { %v510_v61 = vpop.f32.mrb[6].mxu0 }
 0x37e   : > { %v1195_v62 = vpop.f32.mrb[7].mxu0  ;;  %v567_v6 = vsel %vm466_vm2, %v510_v61, -inf }
 0x3f2   : > { %v557_v63 = vpop.f32.mrb[8].mxu0 }
 0x3f3   : > { %v1200_v0 = vpop.f32.mrb[9].mxu0  ;;  %v570_v1 = vsel %vm466_vm2, %v557_v63, -inf }
 0x3f4   : > { %571 = vmax.xlane.f32.xlu1 %v570_v1  ;;  %v560_v2 = vpop.f32.mrb[10].mxu0 }
 0x3f5   : > { %v1201_v3 = vpop.f32.mrb[11].mxu0  ;;  %v573_v4 = vsel %vm466_vm2, %v560_v2, -inf }
 0x3f6   : > { %574 = vmax.xlane.f32.xlu0 %v573_v4 }
 0x3fa   : > { %565 = vmax.xlane.f32.xlu0 %v564_v5 }
 0x3fe   : > { %568 = vmax.xlane.f32.xlu0 %v567_v6 }
 0x481   : > { %v572_v7 = vpop.xlane.xlu1 %571 }
 0x482   : > { %v578_v8 = vsub.f32 %v557_v63, %v572_v7  ;;  %v1121_v63 = vld [vmem:[%s1566_s4] ss:$0 sm:$0xff] }
 0x483   : > { %v575_v9 = vpop.xlane.xlu0 %574 }
 0x484   : > { %v584_v10 = vmul.f32 1.442695, %v578_v8  ;;  %v579_v11 = vsub.f32 %v560_v2, %v575_v9 }
 0x486   : > { %1292 = vpow2.f32 %v584_v10  ;;  %v586_v12 = vmul.f32 1.442695, %v579_v11 }
 0x487   : > { %v566_v13 = vpop.xlane.xlu0 %565 }
 0x488   : > { %1294 = vpow2.f32 %v586_v12  ;;  %v576_v16 = vsub.f32 %v507_v59, %v566_v13 }
 0x48a   : > { %v580_v17 = vmul.f32 1.442695, %v576_v16 }
 0x48b   : > { %v569_v18 = vpop.xlane.xlu0 %568 }
 0x48c   : > { %1296 = vpow2.f32 %v580_v17  ;;  %v577_v19 = vsub.f32 %v510_v61, %v569_v18 }
 0x48e   : > { %v582_v20 = vmul.f32 1.442695, %v577_v19 }
 0x490   : > { %v1293_v21 = vpop.eup %1292  ;;  %1298 = vpow2.f32 %v582_v20  ;;  %v1278_v20 = vld [vmem:[%s1567_s5] sm:$0xff]  }
 0x491   : > { %v594_v22 = vsel %vm466_vm2, %v1293_v21, 0.0 }
 0x492   : > { %v1295_v23 = vpop.eup %1294  ;;  %595 = vadd.xlane.f32.xlu1 %v594_v22 }
 0x493   : > { %v597_v24 = vsel %vm466_vm2, %v1295_v23, 0.0 }
 0x494   : > { %598 = vadd.xlane.f32.xlu0 %v597_v24 }
 0x496   : > { %v1297_v25 = vpop.eup %1296 }
 0x497   : > { %v588_v26 = vsel %vm466_vm2, %v1297_v25, 0.0 }
 0x498   : > { %589 = vadd.xlane.f32.xlu0 %v588_v26 }
 0x49a   : > { %v1299_v27 = vpop.eup %1298 }
 0x49b   : > { %v591_v28 = vsel %vm466_vm2, %v1299_v27, 0.0 }
 0x49c   : > { %592 = vadd.xlane.f32.xlu0 %v591_v28 }
 0x4a3   : > { %657 = vrot.lane.b32.xlu1 %v462_v56, %s1328_s23 }
 0x4b2   : > { %610 = vrot.lane.b32.xlu0 %v1438_v50, %s1328_s23  ;;  %s332_s23 = scalar_lea.vmem %s1571_s9, %s1154_s11 }
 0x51f   : > { %v596_v30 = vpop.xlane.xlu1 %595 }
 0x520   : > { %1300 = vrcp.f32 %v596_v30 }
 0x521   : > { %v599_v31 = vpop.xlane.xlu0 %598 }
 0x522   : > { %1302 = vrcp.f32 %v599_v31 }
 0x523   : > { %v658_v32 = vpop.permute.xlu1 %657 }
 0x524   : > { %1209 = vmatpush3.bf16.msra.mxu0 %v658_v32 }
 0x525   : > { %v590_v33 = vpop.xlane.xlu0 %589  ;;  %1222 = vmatprep.subr.bf16.mxu0 %v1324_v29 }
 0x526   : > { %1304 = vrcp.f32 %v590_v33 }
 0x529   : > { %v593_v34 = vpop.xlane.xlu0 %592 }
 0x52a   : > { %v1301_v35 = vpop.eup %1300  ;;  %1306 = vrcp.f32 %v593_v34  ;;  %v1280_v34 = vld [vmem:[%s1569_s7] sm:$0xff]  }
 0x52b   : > { %v606_v37 = vmul.f32 %v1301_v35, %v1293_v21  ;;  %v1279_v21 = vld [vmem:[%s1567_s5 + $0x8] sm:$0xff]  }
 0x52c   : > { %v1303_v36 = vpop.eup %1302  ;;  %v1281_v35 = vld [vmem:[%s1569_s7 + $0x8] sm:$0xff]  }
 0x52d   : > { %v607_v38 = vmul.f32 %v1303_v36, %v1295_v23  ;;  %v611_v39 = vpop.permute.xlu0 %610  ;;  %v1282_v36 = vld [vmem:[%s1569_s7 + $0x10] sm:$0xff]  }
 0x52e   : > { %1203 = vmatpush3.bf16.msra.mxu1 %v611_v39  ;;  %v1285_v39 = vld [vmem:[%s1569_s7 + $0x28] sm:$0xff]  }
 0x52f   : > { %v609_v40 = vpack.c.bf16 %v607_v38, %v606_v37  ;;  %1214 = vmatprep.subr.bf16.mxu1 %v1324_v29  ;;  %v1283_v37 = vld [vmem:[%s1569_s7 + $0x18] sm:$0xff]   ;;  %v1284_v38 = vld [vmem:[%s1569_s7 + $0x20] sm:$0xff]  }
 0x530   : > { %v1305_v41 = vpop.eup %1304 }
 0x531   : > { %1211 = vmatmul.mubr.msk.bf16.vlgmr.msra.gmra.mrb[12].mxu0 %vm466_vm2, %v609_v40  ;;  %v604_v43 = vmul.f32 %v1305_v41, %v1297_v25  ;;  %v1286_v40 = vld [vmem:[%s1569_s7 + $0x30] sm:$0xff]   ;;  %v1287_v41 = vld [vmem:[%s1569_s7 + $0x38] sm:$0xff]  }
 0x532   : > { %1226 = vmatprep.mubr.msk.bf16.mxu0 %vm1325_vm1, %v1324_v29  ;;  %1223 = vmatpush3.bf16.msra.mxu0 %v1278_v20 }
 0x533   : > { %1224 = vmatprep.subr.bf16.mxu0 %v1324_v29 }
 0x534   : > { %v1307_v42 = vpop.eup %1306 }
 0x535   : > { %v605_v44 = vmul.f32 %v1307_v42, %v1299_v27  ;;  %v1125_v42 = vld [vmem:[%s1568_s6] ss:$0 sm:$0xff] }
 0x536   : > { %1225 = vmatpush3.bf16.msra.mxu0 %v1279_v21 }
 0x537   : > { %v608_v45 = vpack.c.bf16 %v605_v44, %v604_v43 }
 0x539   : > { %1205 = vmatmul.mubr.msk.bf16.vlgmr.msra.gmra.mrb[0].mxu1 %vm466_vm2, %v608_v45 }
 0x53a   : > { %1218 = vmatprep.mubr.msk.bf16.mxu1 %vm1325_vm1, %v1324_v29  ;;  %1215 = vmatpush3.bf16.msra.mxu1 %v1276_v46 }
 0x53b   : > { %1216 = vmatprep.subr.bf16.mxu1 %v1324_v29 }
 0x53e   : > { %1217 = vmatpush3.bf16.msra.mxu1 %v1277_v47 }
 0x53f   : > { %1230 = vmatprep.subr.bf16.mxu1 %v1324_v29 }
 0x604   : > { %v697_v48 = vpop.f32.mrb[12].mxu0 }
 0x605   : > { %v1212_v49 = vpop.f32.mrb[13].mxu0 }
 0x606   : > { %v700_v50 = vpop.f32.mrb[14].mxu0 }
 0x607   : > { %v1269_v51 = vpack.i.bf16 %v700_v50, %v697_v48  ;;  %v1213_v52 = vpop.f32.mrb[15].mxu0 }
 0x609   : > { %1270 = vrot.lane.b32.xlu1 %v1269_v51, %s1329_s28 }
 0x60c   : > { %v650_v53 = vpop.f32.mrb[0].mxu1 }
 0x60d   : > { %v1206_v54 = vpop.f32.mrb[1].mxu1 }
 0x60e   : > { %v653_v55 = vpop.f32.mrb[2].mxu1 }
 0x60f   : > { %v1207_v56 = vpop.f32.mrb[3].mxu1 }
 0x67b   : > { %v1271_v57 = vpop.permute.xlu1 %1270 }
 0x67c   : > { %v1273_v58 = vunpack.i.h.bf16 %v1271_v57  ;;  %v1272_v59 = vunpack.i.l.bf16 %v1271_v57 }
 0x67e   : > { %v713_v60 = vsel %vm466_vm2, %v653_v55, %v1273_v58  ;;  %v712_v61 = vsel %vm466_vm2, %v650_v53, %v1272_v59 }
 0x67f   : > { %v714_v62 = vpack.c.bf16 %v713_v60, %v712_v61 }
 0x681   : > { %1219 = vmatmul.mubr.msk.bf16.vlgmr.msra.gmra.mrb[4].mxu1 %vm357_vm0, %v714_v62 }
 0x682   : > { %1246 = vmatprep.mubr.msk.bf16.mxu1 %vm1325_vm1, %v1324_v29  ;;  %1231 = vmatpush3.bf16.msra.mxu1 %v1280_v34 }
 0x683   : > { %1232 = vmatprep.subr.bf16.mxu1 %v1324_v29 }
 0x686   : > { %1233 = vmatpush3.bf16.msra.mxu1 %v1281_v35 }
 0x687   : > { %1234 = vmatprep.subr.bf16.mxu1 %v1324_v29 }
 0x68a   : > { %1235 = vmatpush3.bf16.msra.mxu1 %v1282_v36 }
 0x68b   : > { %1236 = vmatprep.subr.bf16.mxu1 %v1324_v29 }
 0x68e   : > { %1237 = vmatpush3.bf16.msra.mxu1 %v1283_v37 }
 0x68f   : > { %1238 = vmatprep.subr.bf16.mxu1 %v1324_v29 }
 0x692   : > { %1239 = vmatpush3.bf16.msra.mxu1 %v1284_v38 }
 0x693   : > { %1240 = vmatprep.subr.bf16.mxu1 %v1324_v29 }
 0x696   : > { %1241 = vmatpush3.bf16.msra.mxu1 %v1285_v39 }
 0x697   : > { %1242 = vmatprep.subr.bf16.mxu1 %v1324_v29 }
 0x69a   : > { %1243 = vmatpush3.bf16.msra.mxu1 %v1286_v40 }
 0x69b   : > { %1244 = vmatprep.subr.bf16.mxu1 %v1324_v29 }
 0x69e   : > { %1245 = vmatpush3.bf16.msra.mxu1 %v1287_v41 }
 0x754   : > { %v775_v0 = vpop.f32.mrb[4].mxu1 }
 0x755   : > { %v776_v1 = vadd.f32 %v1121_v63, %v775_v0  ;;  %v1220_v2 = vpop.f32.mrb[5].mxu1 }
 0x756   : > { %v778_v3 = vpop.f32.mrb[6].mxu1 }
 0x757   : > { %v1486_v4 = vadd.f32 %v776_v1, %v1406_v14  ;;  %v779_v5 = vadd.f32 %v1121_v63, %v778_v3  ;;  %v1221_v6 = vpop.f32.mrb[7].mxu1  ;;  %v1129_v3 = vld [vmem:[%s1570_s8] ss:$0 sm:$0xff] }
 0x759   : > { %v1489_v7 = vadd.f32 %v779_v5, %v1408_v15  ;;  %v784_v8 = vsel %vm357_vm0, %v1486_v4, 0.0 }
 0x75a   : > { %785 = vadd.xlane.f32.xlu1 %v784_v8 }
 0x75b   : > { %v787_v9 = vsel %vm357_vm0, %v1489_v7, 0.0 }
 0x75c   : > { %788 = vadd.xlane.f32.xlu0 %v787_v9  ;;  %v1011_v9 = vld [vmem:[%s1396_s14] ss:$4 sm:$0xff] }
 0x7e7   : > { %v786_v10 = vpop.xlane.xlu1 %785 }
 0x7e8   : > { %v790_v11 = vmul.f32 0.03125, %v786_v10 }
 0x7e9   : > { %v789_v12 = vpop.xlane.xlu0 %788 }
 0x7ea   : > { %v792_v13 = vsub.f32 %v1486_v4, %v790_v11  ;;  %v791_v14 = vmul.f32 0.03125, %v789_v12 }
 0x7ec   : > { %v793_v16 = vsub.f32 %v1489_v7, %v791_v14  ;;  %v794_v17 = vmul.f32 %v792_v13, %v792_v13  ;;  %v1138_v14 = vld [vmem:[%s1396_s14 + $0x20] ss:$4 sm:$0xff] }
 0x7ee   : > { %v796_v15 = vsel %vm357_vm0, %v794_v17, 0.0  ;;  %v795_v18 = vmul.f32 %v793_v16, %v793_v16 }
 0x7ef   : > { %797 = vadd.xlane.f32.xlu1 %v796_v15 }
 0x7f0   : > { %v799_v19 = vsel %vm357_vm0, %v795_v18, 0.0 }
 0x7f3   : > { %800 = vadd.xlane.f32.xlu1 %v799_v19 }
 0x87c   : > { %v798_v22 = vpop.xlane.xlu1 %797 }
 0x87d   : > { %v802_v23 = vmul.f32 0.03125, %v798_v22 }
 0x87f   : > { %v804_v24 = vadd.f32 1e-05, %v802_v23 }
 0x880   : > { %v801_v25 = vpop.xlane.xlu1 %800 }
 0x881   : > { %v803_v26 = vmul.f32 0.03125, %v801_v25  ;;  %1308 = vrsqrt.f32 %v804_v24 }
 0x883   : > { %v805_v27 = vadd.f32 1e-05, %v803_v26 }
 0x885   : > { %1310 = vrsqrt.f32 %v805_v27 }
 0x88b   : > { %v1309_v28 = vpop.eup %1308 }
 0x88c   : > { %v808_v31 = vmul.f32 %v1309_v28, %v792_v13 }
 0x88f   : > { %v1311_v30 = vpop.eup %1310 }
 0x890   : > { %v809_v32 = vmul.f32 %v1311_v30, %v793_v16 }
 0x892   : > { %v810_v33 = vpack.c.bf16 %v809_v32, %v808_v31 }
 0x894   : > { %1227 = vmatmul.mubr.msk.bf16.vlgmr.msra.gmra.mrb[16].mxu0 %vm357_vm0, %v810_v33 }
 0x967   : > { %v871_v43 = vpop.f32.mrb[16].mxu0 }
 0x968   : > { %v872_v44 = vadd.f32 %v1125_v42, %v871_v43  ;;  %v1228_v45 = vpop.f32.mrb[17].mxu0 }
 0x969   : > { %v874_v46 = vpop.f32.mrb[18].mxu0 }
 0x96a   : > { %v878_v47 = vmul.f32 %v872_v44, %v872_v44  ;;  %v875_v48 = vadd.f32 %v1125_v42, %v874_v46  ;;  %v1229_v49 = vpop.f32.mrb[19].mxu0 }
 0x96c   : > { %v880_v50 = vmul.f32 %v878_v47, %v872_v44  ;;  %v879_v51 = vmul.f32 %v875_v48, %v875_v48 }
 0x96e   : > { %v882_v52 = vmul.f32 0.044715, %v880_v50  ;;  %v881_v29 = vmul.f32 %v879_v51, %v875_v48 }
 0x970   : > { %v884_v53 = vadd.f32 %v882_v52, %v872_v44  ;;  %v883_v54 = vmul.f32 0.044715, %v881_v29 }
 0x972   : > { %v886_v55 = vmul.f32 0.7978846, %v884_v53  ;;  %v885_v56 = vadd.f32 %v883_v54, %v875_v48 }
 0x974   : > { %1312 = vtanh.f32 %v886_v55  ;;  %v887_v57 = vmul.f32 0.7978846, %v885_v56 }
 0x976   : > { %1314 = vtanh.f32 %v887_v57 }
 0x97e   : > { %v1313_v58 = vpop.eup %1312 }
 0x97f   : > { %v890_v59 = vadd.f32 1.0, %v1313_v58 }
 0x980   : > { %v1315_v60 = vpop.eup %1314 }
 0x981   : > { %v892_v61 = vmul.f32 0.5, %v890_v59  ;;  %v891_v62 = vadd.f32 1.0, %v1315_v60 }
 0x983   : > { %v893_v63 = vmul.f32 0.5, %v891_v62  ;;  %v894_v0 = vmul.f32 %v892_v61, %v872_v44 }
 0x985   : > { %v895_v1 = vmul.f32 %v893_v63, %v875_v48 }
 0x987   : > { %v896_v2 = vpack.c.bf16 %v895_v1, %v894_v0 }
 0x989   : > { %1247 = vmatmul.mubr.bf16.vlgmr.msra.gmra.mrb[8].mxu1 %v896_v2 }
 0xa5c   : > { %v1002_v5 = vpop.f32.mrb[8].mxu1 }
 0xa5d   : > { %v1003_v6 = vadd.f32 %v1129_v3, %v1002_v5  ;;  %v1248_v8 = vpop.f32.mrb[9].mxu1 }
 0xa5e   : > { %v1005_v10 = vpop.f32.mrb[10].mxu1 }
 0xa5f   : > { %v1009_v11 = vadd.f32 %v1003_v6, %v1486_v4  ;;  %v1006_v12 = vadd.f32 %v1129_v3, %v1005_v10  ;;  %v1249_v13 = vpop.f32.mrb[11].mxu1 }
 0xa61   : > { %v1013_v16 = vadd.f32 %v1011_v9, %v1009_v11  ;;  %v1010_v17 = vadd.f32 %v1006_v12, %v1489_v7 }
 0xa63   : > { %v1014_v15 = vadd.f32 %v1138_v14, %v1010_v17  ;;  %1015 = vst [vmem:[%s332_s23] ss:$4 sm:$0xff] %v1013_v16 }
 0xa65   : > { %1139 = vst [vmem:[%s332_s23 + $0x20] ss:$4 sm:$0xff] %v1014_v15 }
 0xa6c   : > { %v1140_v18 = vld [vmem:[%s1396_s14 + $0x1] ss:$4 sm:$0xff] }
 0xa6d   : > { %v1141_v4 = vld [vmem:[%s1396_s14 + $0x21] ss:$4 sm:$0xff]  ;;  %v1020_v19 = vadd.f32 %v1140_v18, %v1009_v11 }
 0xa6e   : > { %v1021_v20 = vadd.f32 %v1141_v4, %v1010_v17 }
 0xa6f   : > { %1142 = vst [vmem:[%s332_s23 + $0x1] ss:$4 sm:$0xff] %v1020_v19 }
 0xa70   : > { %1143 = vst [vmem:[%s332_s23 + $0x21] ss:$4 sm:$0xff] %v1021_v20 }
 0xa77   : > { %v1144_v21 = vld [vmem:[%s1396_s14 + $0x2] ss:$4 sm:$0xff] }
 0xa78   : > { %v1145_v22 = vld [vmem:[%s1396_s14 + $0x22] ss:$4 sm:$0xff]  ;;  %v1028_v23 = vadd.f32 %v1144_v21, %v1009_v11 }
 0xa79   : > { %v1029_v24 = vadd.f32 %v1145_v22, %v1010_v17 }
 0xa7a   : > { %1146 = vst [vmem:[%s332_s23 + $0x2] ss:$4 sm:$0xff] %v1028_v23 }
 0xa7b   : > { %1147 = vst [vmem:[%s332_s23 + $0x22] ss:$4 sm:$0xff] %v1029_v24 }
 0xa82   : > { %v1148_v25 = vld [vmem:[%s1396_s14 + $0x3] ss:$4 sm:$0xff] }
 0xa83   : > { %v1149_v26 = vld [vmem:[%s1396_s14 + $0x23] ss:$4 sm:$0xff]  ;;  %v1036_v7 = vadd.f32 %v1148_v25, %v1009_v11 }
 0xa84   : > { %v1037_v27 = vadd.f32 %v1149_v26, %v1010_v17 }
 0xa85   : > { %1150 = vst [vmem:[%s332_s23 + $0x3] ss:$4 sm:$0xff] %v1036_v7 }
 0xa86   : > { %1151 = vst [vmem:[%s332_s23 + $0x23] ss:$4 sm:$0xff] %v1037_v27 }
 0xa87 PF: > { %s19_s30 = sadd.s32 1, %s1322_s30  }
 0xa88   : > { %p16_p4 = scmp.ge.s32.totalorder %s19_s30, 4  }
 0xa8a   :  { %18 = sbr.rel (!%p16_p4) target bundleno = 1 (0x1), region = 100 }

</bundles_post_ra>
